<compile_context>
chip_gen: v5e
topology: v5e:2x2
jax: 0.10.0
libtpu: 0.0.40
codegen_flags: <defaults>
</compile_context>

<pallas_src>
import functools

import jax
import jax.numpy as jnp
from jax.experimental import pallas as pl


def _round_up(x: int, m: int) -> int:
    return ((x + m - 1) // m) * m


def _gcn_rank1_kernel(x_ref, w_ref, b_ref, o_ref, *, inv_n: float):
    # colmean(X): [1, in_dim] — sublane (XLU) reduction; replaces the adj @ (.) matmul.
    col_mean = jnp.sum(x_ref[...], axis=0, keepdims=True) * inv_n
    # (colmean(X) @ W) + b : [1, out_dim] — single small MXU matmul, f32 accumulation.
    row = jnp.dot(col_mean, w_ref[...], preferred_element_type=jnp.float32) + b_ref[...]
    # adj = ones(N, N) / N makes every output row identical: broadcast store (lane-dense).
    o_ref[...] = jnp.broadcast_to(row, o_ref.shape).astype(o_ref.dtype)


def text_gcn_encoder(text: jax.Array, weight: jax.Array, bias: jax.Array) -> jax.Array:
    """Forward pass of TextGcnEncoder.

    text   : [N, in_dim]  float32
    weight : [in_dim, out_dim]
    bias   : [out_dim]
    returns: [N, out_dim]  ==  (ones(N,N)/N) @ (text @ weight) + bias
    """
    n, in_dim = text.shape
    out_dim = weight.shape[1]

    # Lane-dense padding: round feature (lane) dims up to a multiple of 128.
    # Zero columns of X meet zero rows of W, so results are unchanged; padded
    # output columns are exactly 0 and are sliced off below.
    in_p = _round_up(in_dim, 128)
    out_p = _round_up(out_dim, 128)

    x = text.astype(jnp.float32)
    w = weight.astype(jnp.float32)
    b = bias.astype(jnp.float32).reshape(1, out_dim)
    if in_p != in_dim:
        x = jnp.pad(x, ((0, 0), (0, in_p - in_dim)))
        w = jnp.pad(w, ((0, in_p - in_dim), (0, 0)))
    if out_p != out_dim:
        w = jnp.pad(w, ((0, 0), (0, out_p - out_dim)))
        b = jnp.pad(b, ((0, 0), (0, out_p - out_dim)))

    out = pl.pallas_call(
        functools.partial(_gcn_rank1_kernel, inv_n=1.0 / n),
        out_shape=jax.ShapeDtypeStruct((n, out_p), jnp.float32),
        grid=(),  # single invocation: whole (tiny) working set resident in VMEM
        in_specs=[
            pl.BlockSpec((n, in_p), lambda: (0, 0)),
            pl.BlockSpec((in_p, out_p), lambda: (0, 0)),
            pl.BlockSpec((1, out_p), lambda: (0, 0)),
        ],
        out_specs=pl.BlockSpec((n, out_p), lambda: (0, 0)),
    )(x, w, b)

    if out_p != out_dim:
        out = out[:, :out_dim]
    return out


if __name__ == "__main__":
    # Small shapes consistent with the module: N text nodes, in_dim -> out_dim.
    N, IN_DIM, OUT_DIM = 8, 32, 32

    key = jax.random.PRNGKey(0)
    k_text, k_w, k_b = jax.random.split(key, 3)

    text = jax.random.normal(k_text, (N, IN_DIM), dtype=jnp.float32)
    # Deterministic parameter init mirroring GraphConvolutionLayer shapes:
    # weight [in_dim, out_dim], bias [out_dim].
    weight = jax.random.normal(k_w, (IN_DIM, OUT_DIM), dtype=jnp.float32) * (1.0 / IN_DIM ** 0.5)
    bias = jax.random.normal(k_b, (OUT_DIM,), dtype=jnp.float32) * 0.01

    out = jax.block_until_ready(text_gcn_encoder(text, weight, bias))

    # Pure-JAX reference of the original (two-matmul) semantics.
    adj_ref = jnp.full((N, N), 1.0 / N, dtype=jnp.float32)
    ref = adj_ref @ (text @ weight) + bias[None, :]
    assert out.shape == (N, OUT_DIM)
    # Rank-1 rewrite changes float summation order slightly; still well within tol.
    assert jnp.allclose(out, ref, atol=1e-5, rtol=1e-5), float(jnp.max(jnp.abs(out - ref)))

    print("KERNEL_OK")
</pallas_src>

<mosaic_0001>
module attributes {stable_mosaic.version = 11 : i64} {
  func.func @_gcn_rank1_kernel(%arg0: memref<8x128xf32, #tpu.memory_space<vmem>>, %arg1: memref<128x128xf32, #tpu.memory_space<vmem>>, %arg2: memref<1x128xf32, #tpu.memory_space<vmem>>, %arg3: memref<8x128xf32, #tpu.memory_space<vmem>>) attributes {dimension_semantics = [], scalar_prefetch = 0 : i64, scratch_operands = 0 : i64, tpu.core_type = #tpu.core_type<tc>} {
    %c0 = arith.constant 0 : index
    %c0_0 = arith.constant 0 : index
    %0 = vector.load %arg0[%c0, %c0_0] : memref<8x128xf32, #tpu.memory_space<vmem>>, vector<8x128xf32>
    %cst = arith.constant dense<0.000000e+00> : vector<128xf32>
    %1 = vector.multi_reduction <add>, %0, %cst [0] : vector<8x128xf32> to vector<128xf32>
    %2 = vector.shape_cast %1 : vector<128xf32> to vector<1x128xf32>
    %cst_1 = arith.constant 1.250000e-01 : f32
    %3 = vector.broadcast %cst_1 : f32 to vector<1x128xf32>
    %4 = arith.mulf %2, %3 : vector<1x128xf32>
    %c0_2 = arith.constant 0 : index
    %c0_3 = arith.constant 0 : index
    %5 = vector.load %arg1[%c0_2, %c0_3] : memref<128x128xf32, #tpu.memory_space<vmem>>, vector<128x128xf32>
    %cst_4 = arith.constant dense<0.000000e+00> : vector<1x128xf32>
    %6 = tpu.matmul %4, %5, %cst_4 {dimension_numbers = #tpu.dot_dimension_numbers<[1], [0], [0], [1], [0, 0, 1, 1], [], []>} : vector<1x128xf32>, vector<128x128xf32>, vector<1x128xf32> -> vector<1x128xf32>
    %c0_5 = arith.constant 0 : index
    %c0_6 = arith.constant 0 : index
    %7 = vector.load %arg2[%c0_5, %c0_6] : memref<1x128xf32, #tpu.memory_space<vmem>>, vector<1x128xf32>
    %8 = arith.addf %6, %7 : vector<1x128xf32>
    %9 = vector.shape_cast %8 : vector<1x128xf32> to vector<1x128xf32>
    %10 = vector.broadcast %9 : vector<1x128xf32> to vector<8x128xf32>
    %c0_7 = arith.constant 0 : index
    %c0_8 = arith.constant 0 : index
    %11 = vector.load %arg3[%c0_7, %c0_8] : memref<8x128xf32, #tpu.memory_space<vmem>>, vector<8x128xf32>
    tpu.vector_store %arg3[%c0_7, %c0_8], %10 {strides = array<i32>} : memref<8x128xf32, #tpu.memory_space<vmem>>, vector<8x128xf32>,
    return
  }
}

</mosaic_0001>

<bundles_post_ra>
// kernel: tpu_custom_call.1
= control target key start
LH: loop header
LB: loop body
LE: loop exit
PB: predicated region body
PF: predicated region fallthrough
CT: control target
= control target key end

     0   :  { %8 = vsyncpa [#allocation3], 0  ;;  %s230_s0 = inlined_call_operand.hbm [shape: f32[8,128], index: 0, kind: input, shape index: {}]   ;;  %s231_s1 = inlined_call_operand.hbm [shape: f32[128,128], index: 1, kind: input, shape index: {}]   ;;  %s232_s2 = inlined_call_operand.vmem [shape: f32[1,128], index: 2, kind: input, shape index: {}]   ;;  %s233_s3 = inlined_call_operand.hbm [shape: f32[8,128], index: 3, kind: output, shape index: {}]  }
   0x1   :  { %9 = vsyncpa [#allocation6], 0 }
   0x2   :  { %10 = vsyncpa [#allocation4], 0  ;;  %s16_s14 = sshll.u32 %s230_s0, 4  ;;  %s193_s15 = smov [#allocation2]   ;;  %s17_s14 = int_to_ptr.hbm [resolvable:$true] %s16_s14 }
   0x3   :  { %s18_s16 = sshll.u32 %s193_s15, 4  ;;  %s26_s19 = sshll.u32 %s231_s1, 4  ;;  %s19_s16 = int_to_ptr.vmem [resolvable:$true] %s18_s16  ;;  %s27_s19 = int_to_ptr.hbm [resolvable:$true] %s26_s19 }
   0x4   :  { %21 = dma.hbm_to_vmem [thread:$0]  %s17_s14, 128, %s19_s16, [#allocation3]  }
   0x5   :  { %s194_s20 = smov [#allocation5]   ;;  %s195_s22 = smov 128  }
   0x6   :  { %s28_s21 = sshll.u32 %s194_s20, 4  ;;  %s196_s23 = smov 8   ;;  %s29_s21 = int_to_ptr.vmem [resolvable:$true] %s28_s21 }
   0x7   :  { %34 = dma.hbm_to_vmem [thread:$0]  %s27_s19, 2048, %s29_s21, [#allocation6], %s195_s22, %s195_s22, %s196_s23  }
   0x8   :  { %187 = dma.done.wait [#allocation3], 128  }
   0x9   :  { %188 = vsyncadd [#allocation3], 4294967168 }
   0xa   :  { %189 = dma.done.wait [#allocation6], 2048  }
   0xb   :  { %190 = vsyncadd [#allocation6], 4294965248  ;;  %v68_v0 = vld [vmem:[#allocation5 + $0x78] sm:$0xff]  ;;  %v67_v1 = vld [vmem:[#allocation5 + $0x70] sm:$0xff]  ;;  %s197_s24 = smov [#allocation7]   ;;  %s99_s28 = sshll.u32 %s233_s3, 4  ;;  %s100_s28 = int_to_ptr.hbm [resolvable:$true] %s99_s28 }
   0xc   :  { %70 = vmatpush.msra.mxu0 %v68_v0  ;;  %v66_v2 = vld [vmem:[#allocation5 + $0x68] sm:$0xff]  ;;  %v65_v3 = vld [vmem:[#allocation5 + $0x60] sm:$0xff]  ;;  %v45_v4 = vld [vmem:[#allocation2] sm:$0xff]  ;;  %s97_s25 = sshll.u32 %s197_s24, 4  ;;  %s98_s25 = int_to_ptr.vmem [resolvable:$true] %s97_s25 }
   0xd   :  { %v64_v5 = vld [vmem:[#allocation5 + $0x58] sm:$0xff]  ;;  %v46_v6 = vrot.slane %v45_v4, 4  ;;  %v63_v7 = vld [vmem:[#allocation5 + $0x50] sm:$0xff]  ;;  %v62_v9 = vld [vmem:[#allocation5 + $0x48] sm:$0xff] }
   0xe   :  { %71 = vmatpush.msra.mxu0 %v67_v1  ;;  %v61_v10 = vld [vmem:[#allocation5 + $0x40] sm:$0xff]  ;;  %v60_v12 = vld [vmem:[#allocation5 + $0x38] sm:$0xff]  ;;  %v59_v13 = vld [vmem:[#allocation5 + $0x30] sm:$0xff] }
   0xf   :  { %v47_v8 = vadd.f32 %v46_v6, %v45_v4  ;;  %v58_v15 = vld [vmem:[#allocation5 + $0x28] sm:$0xff]  ;;  %v57_v16 = vld [vmem:[#allocation5 + $0x20] sm:$0xff]  ;;  %v56_v18 = vld [vmem:[#allocation5 + $0x18] sm:$0xff] }
  0x10   :  { %72 = vmatpush.msra.mxu0 %v66_v2  ;;  %v55_v19 = vld [vmem:[#allocation5 + $0x10] sm:$0xff]  ;;  %v54_v21 = vld [vmem:[#allocation5 + $0x8] sm:$0xff]  ;;  %v53_v22 = vld [vmem:[#allocation5] sm:$0xff] }
  0x11   :  { %v48_v11 = vrot.slane %v47_v8, 2  ;;  %v69_v24 = vld [vmem:[%s232_s2] sm:$0x1] }
  0x12   :  { %73 = vmatpush.msra.mxu0 %v65_v3 }
  0x13   :  { %v49_v14 = vadd.f32 %v48_v11, %v47_v8 }
  0x14   :  { %74 = vmatpush.msra.mxu0 %v64_v5 }
  0x15   :  { %v50_v17 = vrot.slane %v49_v14, 1 }
  0x16   :  { %75 = vmatpush.msra.mxu0 %v63_v7 }
  0x17   :  { %v51_v20 = vadd.f32 %v50_v17, %v49_v14 }
  0x18   :  { %76 = vmatpush.msra.mxu0 %v62_v9 }
  0x19   :  { %v52_v23 = vmul.f32 0.125, %v51_v20 }
  0x1a   :  { %77 = vmatpush.msra.mxu0 %v61_v10 }
  0x1c   :  { %78 = vmatpush.msra.mxu0 %v60_v12 }
  0x1e   :  { %79 = vmatpush.msra.mxu0 %v59_v13 }
  0x20   :  { %80 = vmatpush.msra.mxu0 %v58_v15 }
  0x22   :  { %81 = vmatpush.msra.mxu0 %v57_v16 }
  0x24   :  { %82 = vmatpush.msra.mxu0 %v56_v18 }
  0x26   :  { %83 = vmatpush.msra.mxu0 %v55_v19 }
  0x28   :  { %84 = vmatpush.msra.mxu0 %v54_v21 }
  0x2a   :  { %85 = vmatpush.msra.mxu0 %v53_v22 }
  0x2b   :  { %86 = vmatmul.f32.vlgmr.msra.gmra.mxu0 %v52_v23 }
  0xa8   :  { %v87_v25 = vpop.f32.mrf.mxu0 }
  0xa9   :  { %v88_v26 = vadd.f32 %v87_v25, %v69_v24 }
  0xab   :  { %v90_v27 = vperm.slane %v88_v26, 0 }
  0xad   :  { %91 = vst [vmem:[#allocation7] sm:$0xff] %v90_v27 }
  0xae   :  { %102 = dma.vmem_to_hbm [thread:$0]  %s98_s25, 128, %s100_s28, [#allocation4]  }
  0xaf   :  { %191 = dma.done.wait [#allocation4], 128  }
  0xb0   :  { %192 = vsyncadd [#allocation4], 4294967168 }
  0xb1   :  { %107 = vsyncpa [#allocation3], 1 }
  0xb2   :  { %108 = vsyncpa [#allocation6], 1 }
  0xb3   :  { %109 = vsyncpa [#allocation4], 1 }

</bundles_post_ra>
